<compile_context>
chip_gen: v6e
topology: v6e:2x2x1
jax: 0.10.0
libtpu: 0.0.40
codegen_flags: <defaults>
</compile_context>

<pallas_src>
import functools

import jax
import jax.numpy as jnp
from jax.experimental import pallas as pl
from jax.experimental.pallas import tpu as pltpu

_LANE = 128      # vreg lane width (minor axis)
_SUBLANE = 8     # vreg sublane count (f32)


def _padded_mse_kernel(pred_ref, lab_ref, sum_ref, cnt_ref, *,
                       n_rows, tile_rows, tiles_per_split, padding_value,
                       ragged):
    t = pl.program_id(1)

    @pl.when(t == 0)
    def _init():
        sum_ref[...] = jnp.zeros(sum_ref.shape, sum_ref.dtype)
        cnt_ref[...] = jnp.zeros(cnt_ref.shape, cnt_ref.dtype)

    def _accumulate(row_mask):
        lab = lab_ref[...]                                    # native dtype
        pad_c = jnp.asarray(padding_value, dtype=lab.dtype)
        mask = lab != pad_c                                   # native-dtype compare
        if row_mask is not None:
            mask = jnp.logical_and(mask, row_mask)
        d = pred_ref[...].astype(jnp.float32) - lab.astype(jnp.float32)
        # select (not multiply) so padded terms and garbage rows contribute 0
        elem = jnp.where(mask, d * d, 0.0)
        sum_ref[...] += jnp.sum(elem, axis=0, keepdims=True)[None]
        cnt_ref[...] += jnp.sum(mask.astype(jnp.int32), axis=0, keepdims=True)[None]

    if not ragged:
        # Every block of this problem is fully in-bounds: lean hot path only.
        _accumulate(None)
    else:
        p = pl.program_id(0)
        # Logical (unclamped) row offset of this step; used both to detect the
        # ragged / out-of-range steps and to mask their invalid rows.
        row_start = (p * tiles_per_split + t) * tile_rows
        needs_mask = row_start + tile_rows > n_rows

        @pl.when(jnp.logical_not(needs_mask))
        def _fast():
            _accumulate(None)

        @pl.when(needs_mask)
        def _edge():
            rows = jax.lax.broadcasted_iota(jnp.int32, pred_ref.shape, 0) + row_start
            _accumulate(rows < n_rows)


def padded_mse_loss(outputs, labels, padding_value=-1.0,
                    block_bytes=4 * 1024 * 1024):
    """PaddedLoss with an elementwise-MSE inner loss.

    outputs, labels: same-shape arrays (any rank).  Elements where
    labels == padding_value (compared in labels' native dtype) are ignored.
    Returns scalar f32: sum((outputs - labels)^2 * mask) / mask.sum().

    block_bytes ~= combined bytes of the two input blocks per grid step
    (default 4 MiB => ~2 MiB per input, ~8 MiB double-buffered).
    """
    assert outputs.shape == labels.shape, "outputs/labels shape mismatch"
    assert jnp.issubdtype(outputs.dtype, jnp.floating), "outputs must be float"
    n = outputs.size
    assert n > 0, "empty input"

    # ---- zero-copy 2-D view of the data (free row-major reshapes only) ----
    if n % _LANE == 0:
        n_cols = _LANE                                    # fully lane dense
        pred2d = outputs.reshape(-1, _LANE)
        lab2d = labels.reshape(-1, _LANE)
    else:
        last = outputs.shape[-1] if outputs.ndim >= 1 else 1
        if 1 <= last <= 8192:
            n_cols = last                                 # trailing-dim collapse
            pred2d = outputs.reshape(-1, last)
            lab2d = labels.reshape(-1, last)
        else:
            # TODO(synk): huge arrays whose size AND trailing dim are both
            # 128-unfriendly still pay one HBM pad copy here; a manual-DMA
            # kernel over the flat view would remove it.
            pad = (-n) % _LANE
            pf = jnp.concatenate(
                [outputs.reshape(-1), jnp.zeros((pad,), outputs.dtype)])
            lf = jnp.concatenate(
                [labels.reshape(-1), jnp.full((pad,), padding_value, labels.dtype)])
            n_cols = _LANE
            pred2d = pf.reshape(-1, _LANE)
            lab2d = lf.reshape(-1, _LANE)
    n_rows = pred2d.shape[0]

    # ---- block sizing: by bytes, rounded to the packed-sublane multiple ----
    p_item = jnp.dtype(outputs.dtype).itemsize
    l_item = jnp.dtype(labels.dtype).itemsize
    lane_pad = ((n_cols + _LANE - 1) // _LANE) * _LANE
    row_mult = max(_SUBLANE, _SUBLANE * (4 // max(1, min(p_item, l_item))))
    bytes_per_row = lane_pad * (p_item + l_item)
    raw = max(1, int(block_bytes) // bytes_per_row)
    if raw >= n_rows or row_mult >= n_rows:
        tile_rows = n_rows                                # single full block
    else:
        tile_rows = max(row_mult, (raw // row_mult) * row_mult)

    n_tiles = (n_rows + tile_rows - 1) // tile_rows
    n_splits = 2 if n_tiles >= 2 else 1                   # v7x: one range / TC
    tiles_per_split = (n_tiles + n_splits - 1) // n_splits
    ragged = (n_splits * tiles_per_split * tile_rows) != n_rows

    kernel = functools.partial(
        _padded_mse_kernel,
        n_rows=n_rows, tile_rows=tile_rows, tiles_per_split=tiles_per_split,
        padding_value=padding_value, ragged=ragged)

    # Clamp logically out-of-range tiles (odd tile counts) onto the last valid
    # tile; their contribution is zeroed inside the kernel via the row mask.
    in_map = lambda p, t: (jnp.minimum(p * tiles_per_split + t, n_tiles - 1), 0)
    out_map = lambda p, t: (p, 0, 0)

    sums, cnts = pl.pallas_call(
        kernel,
        out_shape=(jax.ShapeDtypeStruct((n_splits, 1, n_cols), jnp.float32),
                   jax.ShapeDtypeStruct((n_splits, 1, n_cols), jnp.int32)),
        grid=(n_splits, tiles_per_split),
        in_specs=[pl.BlockSpec((tile_rows, n_cols), in_map),
                  pl.BlockSpec((tile_rows, n_cols), in_map)],
        out_specs=(pl.BlockSpec((1, 1, n_cols), out_map),
                   pl.BlockSpec((1, 1, n_cols), out_map)),
        compiler_params=pltpu.CompilerParams(
            dimension_semantics=("parallel", "arbitrary")),
        cost_estimate=pl.CostEstimate(
            flops=6 * n, transcendentals=0,
            bytes_accessed=n * (p_item + l_item) + 8 * n_splits * n_cols),
    )(pred2d, lab2d)

    total = jnp.sum(sums)                  # f32
    count = jnp.sum(cnts)                  # int32 (exact for n < 2**31 elements)
    return total / count.astype(jnp.float32)


def _reference(outputs, labels, padding_value=-1.0):
    mask = labels != jnp.asarray(padding_value, labels.dtype)
    out = outputs.astype(jnp.float32)
    lab = jnp.where(mask, labels, 0).astype(jnp.float32)
    loss = (out - lab) ** 2 * mask
    return loss.sum() / mask.sum()


if __name__ == "__main__":
    key = jax.random.PRNGKey(0)
    ks = jax.random.split(key, 9)
    pad_val = -1.0

    # 1) typical kmol usage: small (batch, targets), f32, zero-copy (R, C) view
    outputs = jax.random.normal(ks[0], (8, 4), dtype=jnp.float32)
    labels = jax.random.normal(ks[1], (8, 4), dtype=jnp.float32)
    labels = jnp.where(jax.random.bernoulli(ks[2], 0.3, (8, 4)), pad_val, labels)
    loss = padded_mse_loss(outputs, labels, padding_value=pad_val)
    jax.block_until_ready(loss)
    ref = _reference(outputs, labels, pad_val)
    assert jnp.allclose(loss, ref, rtol=1e-5, atol=1e-6), (loss, ref)

    # 2) lane-dense path (n % 128 == 0), multi-tile, ragged last tile,
    #    2-way core split (small block_bytes forces several grid steps)
    out2 = jax.random.normal(ks[3], (41, 128), dtype=jnp.float32)
    lab2 = jax.random.normal(ks[4], (41, 128), dtype=jnp.float32)
    lab2 = jnp.where(jax.random.bernoulli(ks[5], 0.25, (41, 128)), pad_val, lab2)
    loss2 = padded_mse_loss(out2, lab2, padding_value=pad_val, block_bytes=8192)
    jax.block_until_ready(loss2)
    ref2 = _reference(out2, lab2, pad_val)
    assert jnp.allclose(loss2, ref2, rtol=1e-5, atol=1e-6), (loss2, ref2)

    # 3) bf16, non-128-aligned size (zero-copy trailing-dim view), clamped
    #    out-of-range tile on the second split, non-representable padding value
    pad3 = -0.1
    out3 = jax.random.normal(ks[6], (41, 96), dtype=jnp.float32).astype(jnp.bfloat16)
    lab3 = jax.random.normal(ks[7], (41, 96), dtype=jnp.float32).astype(jnp.bfloat16)
    lab3 = jnp.where(jax.random.bernoulli(ks[8], 0.25, (41, 96)),
                     jnp.asarray(pad3, jnp.bfloat16), lab3)
    loss3 = padded_mse_loss(out3, lab3, padding_value=pad3, block_bytes=8192)
    jax.block_until_ready(loss3)
    ref3 = _reference(out3, lab3, pad3)
    assert jnp.allclose(loss3, ref3, rtol=1e-4, atol=1e-5), (loss3, ref3)

    print("KERNEL_OK")
</pallas_src>

<mosaic_0001>
module attributes {stable_mosaic.version = 11 : i64} {
  func.func @_padded_mse_kernel(%arg0: i32, %arg1: i32, %arg2: memref<8x4xf32, #tpu.memory_space<vmem>>, %arg3: memref<8x4xf32, #tpu.memory_space<vmem>>, %arg4: memref<1x1x4xf32, #tpu.memory_space<vmem>>, %arg5: memref<1x1x4xi32, #tpu.memory_space<vmem>>) attributes {dimension_semantics = [#tpu.dimension_semantics<parallel>, #tpu.dimension_semantics<arbitrary>], iteration_bounds = array<i64: 1, 1>, scalar_prefetch = 0 : i64, scratch_operands = 0 : i64, tpu.core_type = #tpu.core_type<tc>, window_params = [{transform_indices = @transform_0, window_bounds = array<i64: 8, 4>}, {transform_indices = @transform_1, window_bounds = array<i64: 8, 4>}, {transform_indices = @transform_2, window_bounds = array<i64: 1, 1, 4>}, {transform_indices = @transform_3, window_bounds = array<i64: 1, 1, 4>}]} {
    %c0_i32 = arith.constant 0 : i32
    %0 = arith.cmpi eq, %arg1, %c0_i32 : i32
    %1 = arith.extui %0 : i1 to i32
    %c0_i32_0 = arith.constant 0 : i32
    %2 = arith.cmpi ne, %1, %c0_i32_0 : i32
    scf.if %2 {
      %cst_19 = arith.constant 0.000000e+00 : f32
      %24 = vector.broadcast %cst_19 : f32 to vector<1x1x4xf32>
      %c0_20 = arith.constant 0 : index
      %c0_21 = arith.constant 0 : index
      %c0_22 = arith.constant 0 : index
      %25 = vector.load %arg4[%c0_20, %c0_21, %c0_22] : memref<1x1x4xf32, #tpu.memory_space<vmem>>, vector<1x1x4xf32>
      tpu.vector_store %arg4[%c0_20, %c0_21, %c0_22], %24 {strides = array<i32>} : memref<1x1x4xf32, #tpu.memory_space<vmem>>, vector<1x1x4xf32>,
      %c0_i32_23 = arith.constant 0 : i32
      %26 = vector.broadcast %c0_i32_23 : i32 to vector<1x1x4xi32>
      %c0_24 = arith.constant 0 : index
      %c0_25 = arith.constant 0 : index
      %c0_26 = arith.constant 0 : index
      %27 = vector.load %arg5[%c0_24, %c0_25, %c0_26] : memref<1x1x4xi32, #tpu.memory_space<vmem>>, vector<1x1x4xi32>
      tpu.vector_store %arg5[%c0_24, %c0_25, %c0_26], %26 {strides = array<i32>} : memref<1x1x4xi32, #tpu.memory_space<vmem>>, vector<1x1x4xi32>,
    } else {
    }
    %c0 = arith.constant 0 : index
    %c0_1 = arith.constant 0 : index
    %3 = vector.load %arg3[%c0, %c0_1] : memref<8x4xf32, #tpu.memory_space<vmem>>, vector<8x4xf32>
    %cst = arith.constant -1.000000e+00 : f32
    %4 = vector.broadcast %cst : f32 to vector<8x4xf32>
    %5 = arith.cmpf one, %3, %4 : vector<8x4xf32>
    %c0_2 = arith.constant 0 : index
    %c0_3 = arith.constant 0 : index
    %6 = vector.load %arg2[%c0_2, %c0_3] : memref<8x4xf32, #tpu.memory_space<vmem>>, vector<8x4xf32>
    %7 = arith.subf %6, %3 : vector<8x4xf32>
    %8 = arith.mulf %7, %7 : vector<8x4xf32>
    %cst_4 = arith.constant 0.000000e+00 : f32
    %9 = vector.broadcast %cst_4 : f32 to vector<8x4xf32>
    %10 = arith.select %5, %8, %9 : vector<8x4xi1>, vector<8x4xf32>
    %c0_5 = arith.constant 0 : index
    %c0_6 = arith.constant 0 : index
    %c0_7 = arith.constant 0 : index
    %11 = vector.load %arg4[%c0_5, %c0_6, %c0_7] : memref<1x1x4xf32, #tpu.memory_space<vmem>>, vector<1x1x4xf32>
    %cst_8 = arith.constant dense<0.000000e+00> : vector<4xf32>
    %12 = vector.multi_reduction <add>, %10, %cst_8 [0] : vector<8x4xf32> to vector<4xf32>
    %13 = vector.shape_cast %12 : vector<4xf32> to vector<1x4xf32>
    %14 = vector.shape_cast %13 : vector<1x4xf32> to vector<1x1x4xf32>
    %15 = arith.addf %11, %14 : vector<1x1x4xf32>
    %c0_9 = arith.constant 0 : index
    %c0_10 = arith.constant 0 : index
    %c0_11 = arith.constant 0 : index
    %16 = vector.load %arg4[%c0_9, %c0_10, %c0_11] : memref<1x1x4xf32, #tpu.memory_space<vmem>>, vector<1x1x4xf32>
    tpu.vector_store %arg4[%c0_9, %c0_10, %c0_11], %15 {strides = array<i32>} : memref<1x1x4xf32, #tpu.memory_space<vmem>>, vector<1x1x4xf32>,
    %c0_12 = arith.constant 0 : index
    %c0_13 = arith.constant 0 : index
    %c0_14 = arith.constant 0 : index
    %17 = vector.load %arg5[%c0_12, %c0_13, %c0_14] : memref<1x1x4xi32, #tpu.memory_space<vmem>>, vector<1x1x4xi32>
    %18 = arith.extui %5 : vector<8x4xi1> to vector<8x4xi32>
    %cst_15 = arith.constant dense<0> : vector<4xi32>
    %19 = vector.multi_reduction <add>, %18, %cst_15 [0] : vector<8x4xi32> to vector<4xi32>
    %20 = vector.shape_cast %19 : vector<4xi32> to vector<1x4xi32>
    %21 = vector.shape_cast %20 : vector<1x4xi32> to vector<1x1x4xi32>
    %22 = arith.addi %17, %21 : vector<1x1x4xi32>
    %c0_16 = arith.constant 0 : index
    %c0_17 = arith.constant 0 : index
    %c0_18 = arith.constant 0 : index
    %23 = vector.load %arg5[%c0_16, %c0_17, %c0_18] : memref<1x1x4xi32, #tpu.memory_space<vmem>>, vector<1x1x4xi32>
    tpu.vector_store %arg5[%c0_16, %c0_17, %c0_18], %22 {strides = array<i32>} : memref<1x1x4xi32, #tpu.memory_space<vmem>>, vector<1x1x4xi32>,
    return
  }
  func.func @transform_0(%arg0: i32, %arg1: i32) -> (i32, i32) {
    %c1_i32 = arith.constant 1 : i32
    %0 = arith.muli %arg0, %c1_i32 : i32
    %1 = arith.addi %0, %arg1 : i32
    %c0_i32 = arith.constant 0 : i32
    %2 = arith.minsi %1, %c0_i32 : i32
    %c0_i32_0 = arith.constant 0 : i32
    %c0_i32_1 = arith.constant 0 : i32
    return %2, %c0_i32_0 : i32, i32
  }
  func.func @transform_1(%arg0: i32, %arg1: i32) -> (i32, i32) {
    %c1_i32 = arith.constant 1 : i32
    %0 = arith.muli %arg0, %c1_i32 : i32
    %1 = arith.addi %0, %arg1 : i32
    %c0_i32 = arith.constant 0 : i32
    %2 = arith.minsi %1, %c0_i32 : i32
    %c0_i32_0 = arith.constant 0 : i32
    %c0_i32_1 = arith.constant 0 : i32
    return %2, %c0_i32_0 : i32, i32
  }
  func.func @transform_2(%arg0: i32, %arg1: i32) -> (i32, i32, i32) {
    %c0_i32 = arith.constant 0 : i32
    %c0_i32_0 = arith.constant 0 : i32
    %c0_i32_1 = arith.constant 0 : i32
    return %arg0, %c0_i32, %c0_i32_0 : i32, i32, i32
  }
  func.func @transform_3(%arg0: i32, %arg1: i32) -> (i32, i32, i32) {
    %c0_i32 = arith.constant 0 : i32
    %c0_i32_0 = arith.constant 0 : i32
    %c0_i32_1 = arith.constant 0 : i32
    return %arg0, %c0_i32, %c0_i32_0 : i32, i32, i32
  }
}

</mosaic_0001>

<bundles_post_ra>
// kernel: tpu_custom_call.1
= control target key start
LH: loop header
LB: loop body
LE: loop exit
PB: predicated region body
PF: predicated region fallthrough
CT: control target
= control target key end

     0   :  { %9 = vsyncpa [#allocation3], 0  ;;  %vm73_vm0 = vcmask 24576   ;;  %vm83_vm1 = vcmask 31744   ;;  %v193_v2 = vmov 0.0   ;;  %v194_v3 = vmov 0   ;;  %s233_s0 = inlined_call_operand.vmem [shape: f32[8,4], index: 0, kind: input, shape index: {}]   ;;  %s234_s1 = inlined_call_operand.vmem [shape: f32[8,4], index: 1, kind: input, shape index: {}]   ;;  %s235_s2 = inlined_call_operand.hbm [shape: f32[1,1,4], index: 2, kind: output, shape index: {0}]   ;;  %s236_s3 = inlined_call_operand.hbm [shape: s32[1,1,4], index: 3, kind: output, shape index: {1}]  }
   0x1   :  { %v76_v0 = vld [vmem:[%s234_s1] sm:$0xff]  ;;  %74 = vst.msk [vmem:[#allocation2] sm:$0x1] %vm73_vm0, %v193_v2  ;;  %75 = vst.msk [vmem:[#allocation4] sm:$0x1] %vm73_vm0, %v194_v3 }
   0x2   :  { %v78_v1 = vld [vmem:[%s233_s0] sm:$0xff]  ;;  %vm77_vm2 = vcmp.ne.f32.partialorder %v76_v0, -1.0 }
   0x3   :  { %v79_v4 = vsub.f32 %v78_v1, %v76_v0 }
   0x4   :  { %10 = vsyncpa [#allocation5], 0  ;;  %v95_v5 = vsel %vm77_vm2, 1, %v194_v3  ;;  %s195_s0 = smov [#allocation4]   ;;  %s196_s16 = smov [#allocation2]  }
   0x5   :  { %v80_v6 = vmul.f32 %v79_v4, %v79_v4  ;;  %v96_v7 = vsel %vm83_vm1, %v95_v5, 0  ;;  %s121_s1 = sshll.u32 %s195_s0, 4  ;;  %s111_s17 = sshll.u32 %s196_s16, 4  ;;  %s122_s1 = int_to_ptr.vmem [resolvable:$true] %s121_s1  ;;  %s112_s17 = int_to_ptr.vmem [resolvable:$true] %s111_s17 }
   0x6   :  { %v97_v8 = vrot.slane %v96_v7, 4  ;;  %s149_s18 = scalar_lea.vmem %s122_s1, 16  ;;  %s153_s19 = scalar_lea.vmem %s122_s1, 32 }
   0x7   :  { %v81_v9 = vsel %vm77_vm2, %v80_v6, 0.0  ;;  %p150_p0 = scmp.ne.s32.totalorder %s122_s1, %s149_s18  ;;  %p154_p1 = scmp.lt.s32.totalorder %s122_s1, %s122_s1 }
   0x8   :  { %v84_v10 = vsel %vm83_vm1, %v81_v9, 0.0  ;;  %v98_v11 = vadd.s32 %v97_v8, %v96_v7  ;;  %v94_v19 = vld [vmem:[#allocation4] sm:$0x1]  ;;  %v82_v22 = vld [vmem:[#allocation2] sm:$0x1]  ;;  %p155_p2 = scmp.lt.s32.totalorder %s153_s19, %s149_s18 }
   0x9   :  { %v85_v12 = vrot.slane %v84_v10, 4 }
   0xa   :  { %v99_v13 = vrot.slane %v98_v11, 2  ;;  %p156_p3 = por %p155_p2, %p154_p1 }
   0xb   :  { %v86_v14 = vadd.f32 %v85_v12, %v84_v10 }
   0xc   :  { %v100_v15 = vadd.s32 %v99_v13, %v98_v11  ;;  %p157_p4 = pnand %p156_p3, %p150_p0 }
   0xd   :  { %v87_v16 = vrot.slane %v86_v14, 2 }
   0xe   :  { %v101_v17 = vrot.slane %v100_v15, 1 }
   0xf   :  { %v88_v18 = vadd.f32 %v87_v16, %v86_v14 }
  0x10   :  { %v102_v20 = vadd.s32 %v101_v17, %v100_v15 }
  0x11   :  { %v89_v21 = vrot.slane %v88_v18, 1 }
  0x12   :  { %v103_v23 = vadd.s32 %v102_v20, %v94_v19 }
  0x13   :  { %v90_v24 = vadd.f32 %v89_v21, %v88_v18 }
  0x14   :  { %104 = vst.msk [vmem:[#allocation4] sm:$0x1] %vm73_vm0, %v103_v23 }
  0x15   :  { %v91_v25 = vadd.f32 %v90_v24, %v82_v22 }
  0x16   :  { %160 = shalt.err (!%p157_p4)
}
  0x17   :  { %124 = dma.vmem_to_hbm [thread:$0]  %s122_s1, 16, %s236_s3, [#allocation5]   ;;  %93 = vst.msk [vmem:[#allocation2] sm:$0x1] %vm73_vm0, %v91_v25 }
  0x18   :  { %s169_s22 = scalar_lea.vmem %s112_s17, 16  ;;  %s173_s23 = scalar_lea.vmem %s112_s17, 32 }
  0x19   :  { %p170_p5 = scmp.ne.s32.totalorder %s112_s17, %s169_s22  ;;  %p174_p6 = scmp.lt.s32.totalorder %s112_s17, %s112_s17 }
  0x1a   :  { %p175_p7 = scmp.lt.s32.totalorder %s173_s23, %s169_s22 }
  0x1c   :  { %p176_p8 = por %p175_p7, %p174_p6 }
  0x1e   :  { %p177_p9 = pnand %p176_p8, %p170_p5 }
  0x20   :  { %180 = shalt.err (!%p177_p9)
}
  0x21   :  { %114 = dma.vmem_to_hbm [thread:$0]  %s112_s17, 16, %s235_s2, [#allocation3]  }
  0x22   :  { %189 = dma.done.wait [#allocation3], 16  }
  0x23   :  { %190 = vsyncadd [#allocation3], 4294967280 }
  0x24   :  { %191 = dma.done.wait [#allocation5], 16  }
  0x25   :  { %192 = vsyncadd [#allocation5], 4294967280 }
  0x26   :  { %131 = vsyncpa [#allocation3], 1 }
  0x27   :  { %132 = vsyncpa [#allocation5], 1 }

</bundles_post_ra>
